<compile_context>
chip_gen: v7x
topology: tpu7x:2x2x1
jax: 0.10.0
libtpu: 0.0.40
codegen_flags: <defaults>
</compile_context>

<pallas_src>
import jax
import jax.numpy as jnp
from jax.experimental import pallas as pl
from jax.experimental.pallas import tpu as pltpu


def _se_kernel(x_ref, w1_ref, b1_ref, w2_ref, b2_ref, o_ref):
    # x_ref/o_ref: (bB, C, HW) in the activation dtype (f32 or bf16)
    # w1: (C, Cr) f32; b1: (1, Cr) f32; w2: (Cr, C) f32; b2: (1, C) f32
    x = x_ref[...]                                       # (bB, C, HW)
    hw = x.shape[-1]

    # Global average pool over spatial positions (lane-axis reduction).
    # f32 accumulation without an explicit upcast temporary of the block.
    y = jnp.sum(x, axis=-1, dtype=jnp.float32) * (1.0 / float(hw))  # (bB, C)

    # FC1 -> ReLU (one fused (bB, C) @ (C, Cr) MXU call per grid step).
    h = jnp.dot(y, w1_ref[...], preferred_element_type=jnp.float32) + b1_ref[...]
    h = jnp.maximum(h, 0.0)                              # (bB, Cr)

    # FC2 -> HSigmoid (relu6(z + 3) / 6)
    z = jnp.dot(h, w2_ref[...], preferred_element_type=jnp.float32) + b2_ref[...]
    s = jnp.clip(z + 3.0, 0.0, 6.0) * (1.0 / 6.0)        # (bB, C) f32

    # Channel-wise scale, applied in the activation dtype (bf16-native VPU on
    # v6e/v7x; v5e upcasts internally — cheap and hidden under streaming DMA).
    o_ref[...] = x * s.astype(x.dtype)[:, :, None]


def _vmem_buffer_bytes(shape, dtype):
    """Padded VMEM footprint of one buffer: last dim -> 128 lanes, second-last
    dim -> a multiple of 8*packing sublanes (packing = 32 bits / itemsize)."""
    itemsize = jnp.dtype(dtype).itemsize
    packing = max(1, 4 // itemsize)
    dims = list(shape)
    if len(dims) == 1:
        dims = [1] + dims
    lead = 1
    for d in dims[:-2]:
        lead *= int(d)
    sub = -(-int(dims[-2]) // (8 * packing)) * (8 * packing)
    lane = -(-int(dims[-1]) // 128) * 128
    return lead * sub * lane * itemsize


def _choose_batch_block(B, sample_vmem_bytes, target_bytes=4 << 20):
    """Largest bB that (a) divides B, (b) keeps the streaming block near
    `target_bytes` of VMEM, and (c) keeps grid length >= 2 (megacore)."""
    cap = max(1, target_bytes // max(1, sample_vmem_bytes))
    if B >= 2:
        cap = min(cap, B // 2)          # grid length >= 2 for the parallel axis
    cap = max(1, min(cap, B))
    for d in range(cap, 0, -1):
        if B % d == 0:
            return d
    return 1


def se_layer(x_nchw, w1, b1, w2, b2, *, donate_x=False):
    """x_nchw: (B, C, H, W) any float dtype; w1: (Cr, C) torch-layout; b1: (Cr,);
    w2: (C, Cr); b2: (C,). Returns (B, C, H, W) in x_nchw.dtype."""
    B, C, H, W = x_nchw.shape
    HW = H * W
    Cr = w1.shape[0]

    # Free reshape: NCHW is contiguous over (H, W), so (B, C, HW) is a view.
    x_flat = x_nchw.reshape(B, C, HW)

    # Present weights as right-multiply matrices (y @ W), biases as (1, n) rows.
    w1_t = w1.T.astype(jnp.float32)              # (C, Cr)
    b1_r = b1.reshape(1, Cr).astype(jnp.float32)
    w2_t = w2.T.astype(jnp.float32)              # (Cr, C)
    b2_r = b2.reshape(1, C).astype(jnp.float32)

    dtype_bytes = jnp.dtype(x_flat.dtype).itemsize

    # --- choose how many samples to batch per grid step -----------------
    sample_vmem = _vmem_buffer_bytes((1, C, HW), x_flat.dtype)
    bB = _choose_batch_block(B, sample_vmem)
    grid_b = B // bB

    block_vmem = bB * sample_vmem
    param_vmem = (_vmem_buffer_bytes(w1_t.shape, jnp.float32)
                  + _vmem_buffer_bytes(b1_r.shape, jnp.float32)
                  + _vmem_buffer_bytes(w2_t.shape, jnp.float32)
                  + _vmem_buffer_bytes(b2_r.shape, jnp.float32))

    # 2x double-buffered input block + 2x output block + 2x (default
    # double-buffered) resident params + slack for Mosaic internal scratch.
    vmem_needed = 4 * block_vmem + 2 * param_vmem + (2 << 20)

    # Per-generation cap: never exceed ~3/4 of physical VMEM (48 MiB on v7x's
    # 64 MiB per TC, ~96 MiB on v5e/v6e's 128 MiB); never set below the
    # 32 MiB v6e/v7x default so we can only relax, not tighten, the budget.
    vmem_cap = 48 << 20
    try:  # trace-time hardware query; fall back to the v7x-safe cap
        vmem_cap = max(vmem_cap,
                       (int(pltpu.get_tpu_info().vmem_capacity_bytes) * 3) // 4)
    except Exception:
        pass
    vmem_limit = int(min(max(vmem_needed, 32 << 20), vmem_cap))

    grid_spec = pltpu.PrefetchScalarGridSpec(
        num_scalar_prefetch=0,
        grid=(grid_b,),
        in_specs=[
            # Batched streaming block (double-buffered by Pallas).
            pl.BlockSpec((bB, C, HW), lambda b: (b, 0, 0)),
            # Tiny FC params: constant block index => fetched once, stay resident.
            pl.BlockSpec((C, Cr), lambda b: (0, 0)),
            pl.BlockSpec((1, Cr), lambda b: (0, 0)),
            pl.BlockSpec((Cr, C), lambda b: (0, 0)),
            pl.BlockSpec((1, C), lambda b: (0, 0)),
        ],
        out_specs=pl.BlockSpec((bB, C, HW), lambda b: (b, 0, 0)),
    )

    compiler_params = pltpu.CompilerParams(
        dimension_semantics=("parallel",),
        vmem_limit_bytes=vmem_limit,
    )

    # Memory-bound op: read x once, write out once; FLOPs are negligible.
    param_hbm = 4 * (w1_t.size + b1_r.size + w2_t.size + b2_r.size)
    cost = pl.CostEstimate(
        flops=2 * B * C * HW + 4 * B * C * Cr,
        transcendentals=0,
        bytes_accessed=2 * B * C * HW * dtype_bytes + param_hbm,
    )

    out_flat = pl.pallas_call(
        _se_kernel,
        out_shape=jax.ShapeDtypeStruct((B, C, HW), x_flat.dtype),
        grid_spec=grid_spec,
        compiler_params=compiler_params,
        cost_estimate=cost,
        input_output_aliases=({0: 0} if donate_x else {}),
    )(x_flat, w1_t, b1_r, w2_t, b2_r)

    return out_flat.reshape(B, C, H, W)


def _reference(x, w1, b1, w2, b2):
    # Pure-JAX reference of the PyTorch forward (f32).
    y = jnp.mean(x, axis=(2, 3))                         # (B, C)
    h = jnp.maximum(y @ w1.T + b1, 0.0)                  # (B, Cr)
    z = h @ w2.T + b2                                    # (B, C)
    s = jnp.clip(z + 3.0, 0.0, 6.0) / 6.0                # HSigmoid
    return x * s[:, :, None, None]


if __name__ == "__main__":
    def run_case(B, C, H, W, reduction, dtype, key):
        Cr = max(C // reduction, 1)
        kx, k1, k2, k3, k4 = jax.random.split(key, 5)
        x = jax.random.normal(kx, (B, C, H, W), dtype=jnp.float32)
        w1 = jax.random.normal(k1, (Cr, C), dtype=jnp.float32) * 0.1
        b1 = jax.random.normal(k2, (Cr,), dtype=jnp.float32) * 0.1
        w2 = jax.random.normal(k3, (C, Cr), dtype=jnp.float32) * 0.1
        b2 = jax.random.normal(k4, (C,), dtype=jnp.float32) * 0.1

        out = jax.block_until_ready(se_layer(x.astype(dtype), w1, b1, w2, b2))
        ref = _reference(x, w1, b1, w2, b2)

        assert out.shape == (B, C, H, W)
        assert out.dtype == jnp.dtype(dtype)
        tol = 1e-5 if dtype == jnp.float32 else 5e-2
        assert jnp.allclose(out.astype(jnp.float32), ref, atol=tol, rtol=tol), (
            f"mismatch vs reference for dtype={dtype}, shape={(B, C, H, W)}")

    key = jax.random.PRNGKey(0)
    k0, k1, k2, k3 = jax.random.split(key, 4)
    run_case(2, 16, 8, 8, 4, jnp.float32, k0)     # small baseline (bB=1, grid=2)
    run_case(8, 32, 8, 8, 4, jnp.float32, k1)     # batched blocks (bB=4, grid=2)
    run_case(4, 64, 7, 7, 4, jnp.bfloat16, k2)    # 7x7 MobileNetV3 tail, bf16 (bB=2)
    run_case(3, 16, 8, 8, 4, jnp.float32, k3)     # odd batch -> bB=1 fallback

    print("KERNEL_OK")
</pallas_src>

<mosaic_0001>
module attributes {stable_mosaic.version = 11 : i64} {
  func.func @_se_kernel(%arg0: i32, %arg1: memref<1x16x64xf32, #tpu.memory_space<vmem>>, %arg2: memref<16x4xf32, #tpu.memory_space<vmem>>, %arg3: memref<1x4xf32, #tpu.memory_space<vmem>>, %arg4: memref<4x16xf32, #tpu.memory_space<vmem>>, %arg5: memref<1x16xf32, #tpu.memory_space<vmem>>, %arg6: memref<1x16x64xf32, #tpu.memory_space<vmem>>) attributes {dimension_semantics = [#tpu.dimension_semantics<parallel>], iteration_bounds = array<i64: 2>, scalar_prefetch = 0 : i64, scratch_operands = 0 : i64, tpu.core_type = #tpu.core_type<tc>, window_params = [{transform_indices = @transform_0, window_bounds = array<i64: 1, 16, 64>}, {pipeline_mode = #tpu.pipeline_mode<synchronous>, transform_indices = @transform_1, window_bounds = array<i64: 16, 4>}, {pipeline_mode = #tpu.pipeline_mode<synchronous>, transform_indices = @transform_2, window_bounds = array<i64: 1, 4>}, {pipeline_mode = #tpu.pipeline_mode<synchronous>, transform_indices = @transform_3, window_bounds = array<i64: 4, 16>}, {pipeline_mode = #tpu.pipeline_mode<synchronous>, transform_indices = @transform_4, window_bounds = array<i64: 1, 16>}, {transform_indices = @transform_5, window_bounds = array<i64: 1, 16, 64>}]} {
    %c0 = arith.constant 0 : index
    %c0_0 = arith.constant 0 : index
    %c0_1 = arith.constant 0 : index
    %0 = vector.load %arg1[%c0, %c0_0, %c0_1] : memref<1x16x64xf32, #tpu.memory_space<vmem>>, vector<1x16x64xf32>
    %cst = arith.constant dense<0.000000e+00> : vector<1x16xf32>
    %1 = vector.multi_reduction <add>, %0, %cst [2] : vector<1x16x64xf32> to vector<1x16xf32>
    %cst_2 = arith.constant 1.562500e-02 : f32
    %2 = vector.broadcast %cst_2 : f32 to vector<1x16xf32>
    %3 = arith.mulf %1, %2 : vector<1x16xf32>
    %c0_3 = arith.constant 0 : index
    %c0_4 = arith.constant 0 : index
    %4 = vector.load %arg2[%c0_3, %c0_4] : memref<16x4xf32, #tpu.memory_space<vmem>>, vector<16x4xf32>
    %cst_5 = arith.constant dense<0.000000e+00> : vector<1x4xf32>
    %5 = tpu.matmul %3, %4, %cst_5 {dimension_numbers = #tpu.dot_dimension_numbers<[1], [0], [0], [1], [0, 0, 1, 1], [], []>} : vector<1x16xf32>, vector<16x4xf32>, vector<1x4xf32> -> vector<1x4xf32>
    %c0_6 = arith.constant 0 : index
    %c0_7 = arith.constant 0 : index
    %6 = vector.load %arg3[%c0_6, %c0_7] : memref<1x4xf32, #tpu.memory_space<vmem>>, vector<1x4xf32>
    %7 = arith.addf %5, %6 : vector<1x4xf32>
    %cst_8 = arith.constant 0.000000e+00 : f32
    %8 = vector.broadcast %cst_8 : f32 to vector<1x4xf32>
    %9 = arith.maximumf %7, %8 : vector<1x4xf32>
    %c0_9 = arith.constant 0 : index
    %c0_10 = arith.constant 0 : index
    %10 = vector.load %arg4[%c0_9, %c0_10] : memref<4x16xf32, #tpu.memory_space<vmem>>, vector<4x16xf32>
    %cst_11 = arith.constant dense<0.000000e+00> : vector<1x16xf32>
    %11 = tpu.matmul %9, %10, %cst_11 {dimension_numbers = #tpu.dot_dimension_numbers<[1], [0], [0], [1], [0, 0, 1, 1], [], []>} : vector<1x4xf32>, vector<4x16xf32>, vector<1x16xf32> -> vector<1x16xf32>
    %c0_12 = arith.constant 0 : index
    %c0_13 = arith.constant 0 : index
    %12 = vector.load %arg5[%c0_12, %c0_13] : memref<1x16xf32, #tpu.memory_space<vmem>>, vector<1x16xf32>
    %13 = arith.addf %11, %12 : vector<1x16xf32>
    %cst_14 = arith.constant 3.000000e+00 : f32
    %14 = vector.broadcast %cst_14 : f32 to vector<1x16xf32>
    %15 = arith.addf %13, %14 : vector<1x16xf32>
    %cst_15 = arith.constant 0.000000e+00 : f32
    %cst_16 = arith.constant 6.000000e+00 : f32
    %16 = vector.broadcast %cst_15 : f32 to vector<1x16xf32>
    %17 = arith.maximumf %16, %15 : vector<1x16xf32>
    %18 = vector.broadcast %cst_16 : f32 to vector<1x16xf32>
    %19 = arith.minimumf %18, %17 : vector<1x16xf32>
    %cst_17 = arith.constant 0.166666672 : f32
    %20 = vector.broadcast %cst_17 : f32 to vector<1x16xf32>
    %21 = arith.mulf %19, %20 : vector<1x16xf32>
    %22 = vector.shape_cast %21 : vector<1x16xf32> to vector<1x16x1xf32>
    %23 = vector.broadcast %22 : vector<1x16x1xf32> to vector<1x16x64xf32>
    %24 = arith.mulf %0, %23 : vector<1x16x64xf32>
    %c0_18 = arith.constant 0 : index
    %c0_19 = arith.constant 0 : index
    %c0_20 = arith.constant 0 : index
    %25 = vector.load %arg6[%c0_18, %c0_19, %c0_20] : memref<1x16x64xf32, #tpu.memory_space<vmem>>, vector<1x16x64xf32>
    tpu.vector_store %arg6[%c0_18, %c0_19, %c0_20], %24 {strides = array<i32>} : memref<1x16x64xf32, #tpu.memory_space<vmem>>, vector<1x16x64xf32>,
    return
  }
  func.func @transform_0(%arg0: i32) -> (i32, i32, i32) {
    %c0_i32 = arith.constant 0 : i32
    %c0_i32_0 = arith.constant 0 : i32
    %c0_i32_1 = arith.constant 0 : i32
    return %arg0, %c0_i32, %c0_i32_0 : i32, i32, i32
  }
  func.func @transform_1(%arg0: i32) -> (i32, i32) {
    %c0_i32 = arith.constant 0 : i32
    %c0_i32_0 = arith.constant 0 : i32
    %c0_i32_1 = arith.constant 0 : i32
    return %c0_i32, %c0_i32_0 : i32, i32
  }
  func.func @transform_2(%arg0: i32) -> (i32, i32) {
    %c0_i32 = arith.constant 0 : i32
    %c0_i32_0 = arith.constant 0 : i32
    %c0_i32_1 = arith.constant 0 : i32
    return %c0_i32, %c0_i32_0 : i32, i32
  }
  func.func @transform_3(%arg0: i32) -> (i32, i32) {
    %c0_i32 = arith.constant 0 : i32
    %c0_i32_0 = arith.constant 0 : i32
    %c0_i32_1 = arith.constant 0 : i32
    return %c0_i32, %c0_i32_0 : i32, i32
  }
  func.func @transform_4(%arg0: i32) -> (i32, i32) {
    %c0_i32 = arith.constant 0 : i32
    %c0_i32_0 = arith.constant 0 : i32
    %c0_i32_1 = arith.constant 0 : i32
    return %c0_i32, %c0_i32_0 : i32, i32
  }
  func.func @transform_5(%arg0: i32) -> (i32, i32, i32) {
    %c0_i32 = arith.constant 0 : i32
    %c0_i32_0 = arith.constant 0 : i32
    %c0_i32_1 = arith.constant 0 : i32
    return %arg0, %c0_i32, %c0_i32_0 : i32, i32, i32
  }
}

</mosaic_0001>

<bundles_post_ra>
// kernel: tpu_custom_call.1
= control target key start
LH: loop header
LB: loop body
LE: loop exit
PB: predicated region body
PF: predicated region fallthrough
CT: control target
= control target key end

     0   :  { %10 = vsyncpa [#allocation3], 0  ;;  %s950_s0 = inlined_call_operand.hbm [shape: f32[2,16,64], index: 0, kind: input, shape index: {}]   ;;  %s951_s1 = inlined_call_operand.vmem [shape: f32[16,4], index: 1, kind: input, shape index: {}]   ;;  %s952_s2 = inlined_call_operand.vmem [shape: f32[1,4], index: 2, kind: input, shape index: {}]   ;;  %s953_s3 = inlined_call_operand.vmem [shape: f32[4,16], index: 3, kind: input, shape index: {}]   ;;  %s954_s4 = inlined_call_operand.vmem [shape: f32[1,16], index: 4, kind: input, shape index: {}]   ;;  %s955_s5 = inlined_call_operand.hbm [shape: f32[2,16,64], index: 5, kind: output, shape index: {}]  }
   0x1   :  { %12 = vsyncpa [#allocation3 + $0x1], 0 }
   0x2   :  { %13 = vsyncpa [#allocation4], 0 }
   0x3   :  { %15 = vsyncpa [#allocation4 + $0x1], 0  ;;  %s761_s18 = smov 0   ;;  %s763_s19 = smov 0  }
   0x4   :  { %s765_s20 = smov 0   ;;  %s767_s21 = smov 0  }
   0x5 LB: > { %s782_s22 = sadd.s32 4294967295, %s720_s21   ;;  %s532_s23 = sadd.s32 4294967294, %s720_s21   ;;  %s720_s21 = sphi %s767_s21, %s968_s21   ;;  %s716_s20 = sphi %s765_s20, %s967_s20   ;;  %s712_s19 = sphi %s763_s19, %s966_s19   ;;  %s708_s18 = sphi %s761_s18, %s965_s18  }
   0x6   : > { %s786_s24 = sadd.s32 1, %s720_s21   ;;  %s28_s25 = sadd.s32 1, %s716_s20 }
   0x7   : > { %s25_s26 = ssub.s32 %s720_s21, %s786_s24  ;;  %p35_p0 = scmp.ne.s32.totalorder %s716_s20, %s712_s19 }
   0x8   : > { %p26_p1 = scmp.eq.s32.totalorder %s25_s26, 0  ;;  %p36_p2 = scmp.eq.s32.totalorder %s720_s21, 0 }
   0x9   : > { %p41_p3 = scmp.ne.s32.totalorder %s712_s19, %s708_s18  ;;  %p42_p4 = scmp.eq.s32.totalorder %s782_s22, 0 }
   0xa   : > { %s798_s27 = scalar_select %p26_p1, %s716_s20, %s28_s25  }
   0xb   : > { %p800_p5 = por %p36_p2, %p35_p0  ;;  %p804_p6 = por %p42_p4, %p41_p3 }
   0xc   : > { %p149_p7 = scmp.eq.s32.totalorder %s782_s22, 1  ;;  %p155_p8 = scmp.eq.s32.totalorder %s532_s23, 1 }
   0xd   : > { %p583_p10 = scmp.lt.s32.totalorder %s720_s21, 2  ;;  %s187_s7 = sand.u32 1, %s716_s20  }
   0xe   : > { %p811_p11 = por %p149_p7, %p35_p0  ;;  %p815_p12 = por %p155_p8, %p41_p3 }
   0xf   : > { %s549_s8 = sshll.u32 %s720_s21, 8  ;;  %s535_s9 = sshll.u32 %s187_s7, 4 }
  0x10   : > { %s959_s30 = scalar_select %p811_p11, 1, 0 }
  0x11   : > { %s960_s6 = scalar_select %p815_p12, 1, 0 }
  0x12   : > { %s824_s12 = scalar_lea.hbm %s950_s0, %s549_s8  ;;  %s191_s13 = scalar_lea.vmem [#allocation2], %s535_s9 }
  0x13   : > { %s198_s14 = sshll.u32 %s191_s13, 4  ;;  %p828_p13 = pnand %p583_p10, %p800_p5  ;;  %s832_s14 = int_to_ptr.vmem [resolvable:$true] %s198_s14 }
  0x14   : > { %s834_s16 = scalar_lea.sflag [#allocation3], %s187_s7  ;;  %s624_s17 = scalar_lea.hbm %s824_s12, 256 }
  0x15   : > { %p625_p0 = scmp.ne.s32.totalorder %s824_s12, %s624_s17  ;;  %p626_p1 = pneg %p828_p13 }
  0x16   : > { %s629_s26 = scalar_lea.hbm %s950_s0, 512  ;;  %p630_p4 = scmp.lt.u32.totalorder %s824_s12, %s950_s0 }
  0x17   : > { %p627_p2 = pnand %p626_p1, %p625_p0  ;;  %p631_p5 = scmp.lt.u32.totalorder %s629_s26, %s624_s17 }
  0x18   : > { %p633_p8 = scmp.lt.u32.totalorder %s624_s17, %s824_s12 }
  0x19   : > { %p628_p3 = pneg %p627_p2  ;;  %p632_p7 = por %p631_p5, %p630_p4 }
  0x1b   : > { %p634_p10 = por %p633_p8, %p632_p7 }
  0x1d   : > { %p635_p9 = pnand %p634_p10, %p628_p3 }
  0x1f   : > { %638 = shalt.err (!%p635_p9)
}
  0x20   : > { %s639_s7 = scalar_lea.vmem %s832_s14, 256  ;;  %s722_s9 = smov [#allocation2]  }
  0x21   : > { %p640_p0 = scmp.ne.s32.totalorder %s832_s14, %s639_s7  ;;  %s644_s10 = sshll.u32 %s722_s9, 4  ;;  %s645_s10 = int_to_ptr.vmem [resolvable:$false] %s644_s10 }
  0x22   : > { %s646_s11 = scalar_lea.vmem %s645_s10, 512  ;;  %p647_p11 = scmp.lt.s32.totalorder %s832_s14, %s645_s10 }
  0x23   : > { %p642_p2 = pnand %p640_p0, %p626_p1  ;;  %p648_p4 = scmp.lt.s32.totalorder %s646_s11, %s639_s7 }
  0x25   : > { %p643_p12 = pneg %p642_p2  ;;  %p649_p5 = por %p648_p4, %p647_p11 }
  0x27   : > { %p650_p7 = pnand %p649_p5, %p643_p12 }
  0x29   : > { %653 = shalt.err (!%p650_p7)
}
  0x2a   : > { %s723_s13 = smov 128   ;;  %s724_s17 = smov 8  }
  0x2b   : > { %578 = dma.hbm_to_vmem [thread:$0]  (!%p828_p13), %s824_s12, 256, %s832_s14, %s834_s16, %s723_s13, %s723_s13, %s724_s17  }
  0x2c   : > { %p538_p9 = scmp.ge.s32.totalorder %s720_s21, 1  ;;  %p206_p1 = scmp.lt.s32.totalorder %s720_s21, 3 }
  0x2e   : > { %p207_p3 = pnand %p538_p9, %p206_p1 }
  0x2f   : > { %s865_s23 = sand.u32 (!%p207_p3), 1, %s712_s19  }
  0x30   : > { %210 = sbr.rel (%p207_p3) target bundleno = 785 (0x311), region = 40  ;;  %s539_s25 = sshll.u32 (!%p207_p3), %s865_s23, 4 }
  0x31   : > { %s213_s26 = scalar_lea.sflag (!%p207_p3), [#allocation3], %s865_s23  ;;  %s216_s28 = scalar_lea.vmem (!%p207_p3), [#allocation2], %s539_s25 }
  0x37   : > { %699 = dma.done.wait (%p804_p6), %s213_s26, 256  }
  0x38   : > { %701 = vsyncadd (%p804_p6), %s213_s26, 4294967040  ;;  %vm245_vm0 = vcmask 523264   ;;  %v243_v0 = vld [vmem:[%s216_s28] sm:$0xff]  ;;  %v875_v1 = vld [vmem:[%s216_s28 + $0x8] sm:$0xff]  ;;  %v725_v7 = vmov 0.0|0.0   ;;  %vm726_vm1 = vmmov 0   ;;  %v259_v9 = vlaneseq }
  0x39   : > { %v246_v2 = vsel %vm245_vm0, %v243_v0, 0.0  ;;  %v249_v3 = vsel %vm245_vm0, %v875_v1, 0.0  ;;  %v254_v4 = vld [vmem:[%s951_s1] sm:$0xff]  ;;  %v255_v5 = vld [vmem:[%s951_s1 + $0x8] sm:$0xff]  ;;  %568 = vmatprep.subr.bf16.mxu0 %v725_v7  ;;  %v727_v8 = vmov 0.0   ;;  %vm270_vm2 = vcmask 130112  }
  0x3a   : > { %247 = vadd.xlane.f32.xlu0 %v246_v2  ;;  %v569_v6 = vpack.c.bf16 %v255_v5, %v254_v4  ;;  %560 = vmatprep.mubr.msk.f32.mxu0 %vm726_vm1, %v727_v8  ;;  %v260_v10 = vand.u32 127, %v259_v9  ;;  %v262_v11 = vshrl.u32 %v259_v9, 7  ;;  %vm272_vm3 = vcmask 130048   ;;  %v346_v22 = vld [vmem:[%s953_s3] sm:$0xf]  ;;  %s242_s13 = scalar_lea.vmem [#allocation5], %s539_s25 }
  0x3b   : > { %563 = vmatprep.subr.mxu1 %v727_v8  ;;  %565 = vmatprep.mubr.msk.f32.mxu1 %vm726_vm1, %v727_v8  ;;  %vm352_vm4 = vcmask 1043456   ;;  %v256_v23 = vld [vmem:[%s952_s2] sm:$0x1]  ;;  %vm348_vm5 = vcmask 31744   ;;  %s459_s17 = sshll.u32 %s242_s13, 4  ;;  %s550_s26 = sshll.u32 %s782_s22, 8  ;;  %s898_s17 = int_to_ptr.vmem [resolvable:$true] %s459_s17 }
  0x3c   : > { %570 = vmatpush3.bf16.msra.mxu0 %v569_v6  ;;  %v265_v12 = vadd.s32 4294967288, %v260_v10  ;;  %v263_v14 = vsub.s32 %v260_v10, %v262_v11  ;;  %564 = vmatpush3.msk.msra.mxu1 %vm352_vm4, %v346_v22  ;;  %v347_v28 = vld [vmem:[%s954_s4] sm:$0x1]  ;;  %v432_v35 = vsub.s32 0, %v262_v11  ;;  %s904_s14 = scalar_lea.hbm %s955_s5, %s550_s26  ;;  %s446_s25 = scalar_lea.sflag [#allocation4], %s865_s23 }
  0x3d   : > { %s654_s15 = scalar_lea.vmem %s898_s17, 256  ;;  %p962_p11 = scmp.ne.s32.totalorder %s959_s30, 0 }
  0x3e   : > { %250 = vadd.xlane.f32.xlu0 %v249_v3  ;;  %v268_v16 = vsub.s32 %v265_v12, %v262_v11  ;;  %p655_p6 = scmp.ne.s32.totalorder %s898_s17, %s654_s15  ;;  %s728_s22 = smov [#allocation5]  }
  0x3f   : > { %s658_s16 = sshll.u32 %s728_s22, 4  ;;  %s659_s16 = int_to_ptr.vmem [resolvable:$false] %s658_s16 }
  0x40   : > { %p656_p12 = pnand %p655_p6, %p962_p11  ;;  %s660_s29 = scalar_lea.vmem %s659_s16, 512 }
  0x41   : > { %p661_p8 = scmp.lt.s32.totalorder %s898_s17, %s659_s16  ;;  %p662_p10 = scmp.lt.s32.totalorder %s660_s29, %s654_s15 }
  0x42   : > { %p657_p13 = pneg %p656_p12 }
  0x43   : > { %p663_p0 = por %p662_p10, %p661_p8 }
  0x45   : > { %p664_p2 = pnand %p663_p0, %p657_p13 }
  0xc7   : > { %v248_v13 = vpop.xlane.xlu0 %247 }
  0xc8   : > { %v252_v15 = vmul.f32 0.015625, %v248_v13 }
  0xca   : > { %v264_v19 = vrot.slane %v252_v15, %v263_v14 }
  0xcb   : > { %v251_v17 = vpop.xlane.xlu0 %250 }
  0xcc   : > { %v253_v18 = vmul.f32 0.015625, %v251_v17 }
  0xce   : > { %v269_v20 = vrot.slane %v253_v18, %v268_v16 }
  0xd0   : > { %v271_v21 = vsel %vm270_vm2, %v269_v20, %v264_v19 }
  0xd1   : > { %561 = vmatmul.mubr.msk.f32.vlgmr.msra.gmra.mrb[0].mxu0 %vm272_vm3, %v271_v21 }
 0x1a4   : > { %v341_v24 = vpop.f32.mrb[0].mxu0 }
 0x1a5   : > { %v342_v25 = vadd.f32 %v341_v24, %v256_v23  ;;  %v562_v26 = vpop.f32.mrb[1].mxu0 }
 0x1a7   : > { %v345_v27 = vmax.f32 %v342_v25, 0.0 }
 0x1a9   : > { %566 = vmatmul.mubr.msk.f32.vlgmr.msra.gmra.mrb[0].mxu1 %vm348_vm5, %v345_v27 }
 0x27c   : > { %v422_v29 = vpop.f32.mrb[0].mxu1 }
 0x27d   : > { %v423_v30 = vadd.f32 %v422_v29, %v347_v28  ;;  %v567_v31 = vpop.f32.mrb[1].mxu1 }
 0x27f   : > { %v426_v32 = vadd.f32 3.0, %v423_v30 }
 0x281   : > { %v427_v33 = vmax.f32 %v426_v32, 0.0 }
 0x283   : > { %v428_v34 = vmin.f32 %v427_v33, 6.0 }
 0x285   : > { %v429_v36 = vmul.f32 0.16666667, %v428_v34 }
 0x287   : > { %v433_v37 = vrot.slane %v429_v36, %v432_v35 }
 0x289   : > { %435 = vbcast.lane.b32.xlu1 %v433_v37, 256 }
 0x28d   : > { %439 = vbcast.lane.b32.xlu1 %v433_v37, 264 }
 0x2fb   : > { %v436_v38 = vpop.permute.xlu1 %435 }
 0x2fc   : > { %v441_v39 = vmul.f32 %v436_v38, %v243_v0 }
 0x2fe   : > { %443 = vst.msk [vmem:[%s242_s13] sm:$0xff] %vm245_vm0, %v441_v39 }
 0x2ff   : > { %v440_v40 = vpop.permute.xlu1 %439 }
 0x300   : > { %v442_v41 = vmul.f32 %v440_v40, %v875_v1 }
 0x302   : > { %444 = vst.msk [vmem:[%s242_s13 + $0x8] sm:$0xff] %vm245_vm0, %v442_v41 }
 0x303   : > { %667 = shalt.err (!%p664_p2)
}
 0x304   : > { %s668_s8 = scalar_lea.hbm %s904_s14, 256  ;;  %s672_s10 = scalar_lea.hbm %s955_s5, 512 }
 0x305   : > { %p669_p4 = scmp.ne.s32.totalorder %s904_s14, %s668_s8  ;;  %p673_p9 = scmp.lt.u32.totalorder %s904_s14, %s955_s5 }
 0x306   : > { %p674_p1 = scmp.lt.u32.totalorder %s672_s10, %s668_s8  ;;  %p676_p6 = scmp.lt.u32.totalorder %s668_s8, %s904_s14 }
 0x307   : > { %p670_p5 = pnand %p669_p4, %p962_p11 }
 0x308   : > { %p675_p3 = por %p674_p1, %p673_p9 }
 0x309   : > { %p671_p7 = pneg %p670_p5 }
 0x30a   : > { %p677_p12 = por %p676_p6, %p675_p3 }
 0x30c   : > { %p678_p13 = pnand %p677_p12, %p671_p7 }
 0x30e   : > { %681 = shalt.err (!%p678_p13)
}
 0x30f   : > { %s729_s26 = smov 128   ;;  %s730_s28 = smov 8  }
 0x310   : > { %573 = dma.vmem_to_hbm [thread:$0]  (%p962_p11), %s898_s17, 256, %s904_s14, %s446_s25, %s729_s26, %s729_s26, %s730_s28  }
 0x311 PF: > { %s474_s12 = sand.u32 1, %s708_s18   ;;  %p963_p8 = scmp.ne.s32.totalorder %s960_s6, 0 }
 0x312   : > { %p964_p10 = scmp.ge.s32.totalorder %s720_s21, 2  ;;  %s475_s15 = scalar_lea.sflag [#allocation4], %s474_s12 }
 0x314   : > { %p580_p0 = pnand %p964_p10, %p963_p8 }
 0x316   : > { %703 = dma.done.wait (!%p580_p0), %s475_s15, 256  }
 0x317   : > { %705 = vsyncadd (!%p580_p0), %s475_s15, 4294967040  ;;  %p18_p2 = scmp.ge.s32.totalorder %s786_s24, 4   ;;  %s965_s18 = smov %s712_s19 }
 0x318   : > { %s966_s19 = smov %s716_s20  ;;  %s967_s20 = smov %s798_s27 }
 0x319   : > { %s968_s21 = smov %s786_s24  ;;  %20 = sbr.rel (!%p18_p2) target bundleno = 5 (0x5), region = 85 }
 0x320   :  { %480 = vsyncpa [#allocation3], 1 }
 0x321   :  { %482 = vsyncpa [#allocation3 + $0x1], 1 }
 0x322   :  { %483 = vsyncpa [#allocation4], 1 }
 0x323   :  { %485 = vsyncpa [#allocation4 + $0x1], 1 }

</bundles_post_ra>
